<compile_context>
chip_gen: v6e
topology: v6e:2x2x1
jax: 0.10.0
libtpu: 0.0.40
codegen_flags: <defaults>
</compile_context>

<pallas_src>
import functools

import jax
import jax.numpy as jnp
from jax.experimental import pallas as pl
from jax.experimental.pallas import tpu as pltpu


def _round_up(n, m):
    return ((n + m - 1) // m) * m


def _auto_block_b(batch, d, out_pad):
    """Pick a batch tile: pipeline-aware for large B, VMEM-aware always."""
    if batch <= 512:
        # Single tile (block == full batch dim is always a legal block shape);
        # per-step overhead (~0.35 us) dominates at this size.
        block = batch
    else:
        # >= 4 grid steps so the BlockSpec pipeline has work to overlap with
        # (and both v7x TensorCores get >= 2 steps each); 512-1024 row tiles
        # already reach ~85% of HBM roofline on v6e.
        block = max(512, min(1024, _round_up(-(-batch // 4), 8)))
    # VMEM budget: double-buffered x + merged-out tiles plus f32 h/z working
    # set.  Stay comfortably under the default scoped-VMEM limit (16 MiB v5e,
    # 32 MiB v6e/v7x) even for wide D.
    per_row = 2 * 4 * (d + out_pad) + 6 * 128 * 4
    budget = 12 * 1024 * 1024
    max_rows = max(8, (budget // per_row) // 8 * 8)
    return int(min(block, max_rows))


def actor_critic_kernel(x_ref, w1_ref, b1_ref, w2_ref, b2_ref, out_ref, *, num_actions):
    """Fused actor+critic forward for one batch tile.

    x_ref:   (tb, D)       input rows
    w1_ref:  (D, 2H)       fused first layer  [actor | critic]
    b1_ref:  (1, 2H)
    w2_ref:  (2H, OUT)     block-diagonal second layer, OUT lane-padded (>=128)
    b2_ref:  (1, OUT)
    out_ref: (tb, OUT)     cols [0, A): softmax probs, col A: critic value, rest: 0
    """
    x = x_ref[...]

    # Layer 1 (both heads in one 128-wide matmul) + ReLU.
    h = jnp.dot(x, w1_ref[...], preferred_element_type=jnp.float32) + b1_ref[...]
    h = jnp.maximum(h, 0.0)

    # Layer 2: block-diagonal -> actor logits in cols [0, A), value in col A.
    z = jnp.dot(h, w2_ref[...], preferred_element_type=jnp.float32) + b2_ref[...]

    out_w = z.shape[-1]
    # One-row column masks, broadcast in the selects (no (tb, OUT) iota).
    col = jax.lax.broadcasted_iota(jnp.int32, (1, out_w), 1)
    is_logit = col < num_actions
    is_value = col == num_actions

    # Numerically-stable masked softmax over the actor columns only.
    masked = jnp.where(is_logit, z, -jnp.inf)
    m = jnp.max(masked, axis=-1, keepdims=True)
    e = jnp.exp(masked - m)                       # exp(-inf) == 0 on non-logit lanes
    denom = jnp.sum(e, axis=-1, keepdims=True)
    probs = e * (1.0 / denom)                     # exact reciprocal (correctness)

    # Merge: probs in cols [0, A), raw value in col A, zeros elsewhere.
    out_ref[...] = jnp.where(is_value, z, probs)


@functools.partial(jax.jit, static_argnames=("num_actions", "block_b"))
def actor_critic_forward(x, w1f, b1f, w2f, b2f, *, num_actions, block_b=None):
    """Fused actor+critic forward pass as a single Pallas kernel.

    x:       (B, input_dim) float32
    w1f/b1f/w2f/b2f: pre-fused weights from fuse_params (computed once)
    returns: (probs (B, num_actions), value (B, 1))
    """
    B, D = x.shape
    OUT_PAD = w2f.shape[1]

    if block_b is None:
        block_b = _auto_block_b(B, D, OUT_PAD)
    grid_steps = pl.cdiv(B, block_b)

    def full(shape):
        return pl.BlockSpec(shape, lambda i: tuple(0 for _ in shape))

    in_specs = [
        pl.BlockSpec((block_b, D), lambda i: (i, 0)),   # x (tiled over batch)
        full(w1f.shape), full(b1f.shape),
        full(w2f.shape), full(b2f.shape),
    ]
    out_specs = pl.BlockSpec((block_b, OUT_PAD), lambda i: (i, 0))
    out_shape = jax.ShapeDtypeStruct((B, OUT_PAD), jnp.float32)

    merged = pl.pallas_call(
        functools.partial(actor_critic_kernel, num_actions=num_actions),
        grid_spec=pl.GridSpec(
            grid=(grid_steps,),
            in_specs=in_specs,
            out_specs=out_specs,
        ),
        out_shape=out_shape,
        compiler_params=pltpu.CompilerParams(
            dimension_semantics=("parallel",),
        ),
    )(x, w1f, b1f, w2f, b2f)

    # Thin slices inside the same jit region; the dominant stream (the merged
    # lane-dense write) happens exactly once inside the kernel.
    probs = merged[:, :num_actions]
    value = merged[:, num_actions:num_actions + 1]
    return probs, value


def fuse_params(params):
    """One-time fusion of the actor/critic weights for the kernel.

    Returns the fused tensors; call once after init / each optimizer step, NOT
    on every forward.
    """
    wa1, ba1, wa2, ba2 = params["wa1"], params["ba1"], params["wa2"], params["ba2"]
    wc1, bc1, wc2, bc2 = params["wc1"], params["bc1"], params["wc2"], params["bc2"]
    H = wa1.shape[1]          # 64
    A = wa2.shape[1]          # output_dim
    HF = 2 * H                # fused hidden width (128)
    OUT_PAD = _round_up(max(A + 1, 128), 128)

    w1f = jnp.concatenate([wa1, wc1], axis=1)                 # (D, 2H)
    b1f = jnp.concatenate([ba1, bc1], axis=1)                 # (1, 2H)
    w2f = jnp.zeros((HF, OUT_PAD), jnp.float32)
    w2f = w2f.at[:H, :A].set(wa2)                             # actor block
    w2f = w2f.at[H:, A:A + 1].set(wc2)                        # critic block
    b2f = jnp.zeros((1, OUT_PAD), jnp.float32)
    b2f = b2f.at[:, :A].set(ba2)
    b2f = b2f.at[:, A:A + 1].set(bc2)
    return dict(w1f=w1f, b1f=b1f, w2f=w2f, b2f=b2f, num_actions=A)


def init_params(key, input_dim, output_dim, hidden=64):
    """Init matching PyTorch nn.Linear default (U(-1/sqrt(fan_in), 1/sqrt(fan_in))).

    Weights are stored as (in_features, out_features) — transposed vs. PyTorch.
    Biases are stored as (1, out_features).
    """
    def linear(k, fan_in, fan_out):
        kw, kb = jax.random.split(k)
        bound = 1.0 / jnp.sqrt(fan_in)
        w = jax.random.uniform(kw, (fan_in, fan_out), jnp.float32, -bound, bound)
        b = jax.random.uniform(kb, (1, fan_out), jnp.float32, -bound, bound)
        return w, b

    k1, k2, k3, k4 = jax.random.split(key, 4)
    wa1, ba1 = linear(k1, input_dim, hidden)
    wa2, ba2 = linear(k2, hidden, output_dim)
    wc1, bc1 = linear(k3, input_dim, hidden)
    wc2, bc2 = linear(k4, hidden, 1)
    return dict(wa1=wa1, ba1=ba1, wa2=wa2, ba2=ba2,
                wc1=wc1, bc1=bc1, wc2=wc2, bc2=bc2)


def reference_forward(x, p):
    """Pure-JAX reference reproducing the PyTorch semantics."""
    h_a = jnp.maximum(x @ p["wa1"] + p["ba1"], 0.0)
    logits = h_a @ p["wa2"] + p["ba2"]
    probs = jax.nn.softmax(logits, axis=-1)
    h_c = jnp.maximum(x @ p["wc1"] + p["bc1"], 0.0)
    value = h_c @ p["wc2"] + p["bc2"]
    return probs, value


if __name__ == "__main__":
    # Non-multiple-of-8 batch and non-power-of-2 action count to exercise
    # the ragged batch tile + lane masking.
    batch, input_dim, output_dim = 10, 16, 6

    key = jax.random.PRNGKey(0)
    k_x, k_p = jax.random.split(key)
    x = jax.random.normal(k_x, (batch, input_dim), jnp.float32)
    params = init_params(k_p, input_dim, output_dim)

    fused = fuse_params(params)   # one-time weight fusion (not per forward)

    probs, value = actor_critic_forward(
        x, fused["w1f"], fused["b1f"], fused["w2f"], fused["b2f"],
        num_actions=fused["num_actions"])
    jax.block_until_ready((probs, value))

    ref_probs, ref_value = reference_forward(x, params)
    assert probs.shape == (batch, output_dim)
    assert value.shape == (batch, 1)
    assert jnp.allclose(probs, ref_probs, atol=1e-5, rtol=1e-5)
    assert jnp.allclose(value, ref_value, atol=1e-5, rtol=1e-5)
    assert jnp.allclose(jnp.sum(probs, axis=-1), 1.0, atol=1e-5)

    print("KERNEL_OK")
</pallas_src>

<mosaic_0001>
module attributes {stable_mosaic.version = 11 : i64} {
  func.func @actor_critic_kernel(%arg0: i32, %arg1: memref<10x16xf32, #tpu.memory_space<vmem>>, %arg2: memref<16x128xf32, #tpu.memory_space<vmem>>, %arg3: memref<1x128xf32, #tpu.memory_space<vmem>>, %arg4: memref<128x128xf32, #tpu.memory_space<vmem>>, %arg5: memref<1x128xf32, #tpu.memory_space<vmem>>, %arg6: memref<10x128xf32, #tpu.memory_space<vmem>>) attributes {dimension_semantics = [#tpu.dimension_semantics<parallel>], iteration_bounds = array<i64: 1>, scalar_prefetch = 0 : i64, scratch_operands = 0 : i64, tpu.core_type = #tpu.core_type<tc>, window_params = [{transform_indices = @transform_0, window_bounds = array<i64: 10, 16>}, {pipeline_mode = #tpu.pipeline_mode<synchronous>, transform_indices = @transform_1, window_bounds = array<i64: 16, 128>}, {pipeline_mode = #tpu.pipeline_mode<synchronous>, transform_indices = @transform_2, window_bounds = array<i64: 1, 128>}, {pipeline_mode = #tpu.pipeline_mode<synchronous>, transform_indices = @transform_3, window_bounds = array<i64: 128, 128>}, {pipeline_mode = #tpu.pipeline_mode<synchronous>, transform_indices = @transform_4, window_bounds = array<i64: 1, 128>}, {transform_indices = @transform_5, window_bounds = array<i64: 10, 128>}]} {
    %c0 = arith.constant 0 : index
    %c0_0 = arith.constant 0 : index
    %0 = vector.load %arg1[%c0, %c0_0] : memref<10x16xf32, #tpu.memory_space<vmem>>, vector<10x16xf32>
    %c0_1 = arith.constant 0 : index
    %c0_2 = arith.constant 0 : index
    %1 = vector.load %arg2[%c0_1, %c0_2] : memref<16x128xf32, #tpu.memory_space<vmem>>, vector<16x128xf32>
    %cst = arith.constant dense<0.000000e+00> : vector<10x128xf32>
    %2 = tpu.matmul %0, %1, %cst {dimension_numbers = #tpu.dot_dimension_numbers<[1], [0], [0], [1], [0, 0, 1, 1], [], []>} : vector<10x16xf32>, vector<16x128xf32>, vector<10x128xf32> -> vector<10x128xf32>
    %c0_3 = arith.constant 0 : index
    %c0_4 = arith.constant 0 : index
    %3 = vector.load %arg3[%c0_3, %c0_4] : memref<1x128xf32, #tpu.memory_space<vmem>>, vector<1x128xf32>
    %4 = vector.broadcast %3 : vector<1x128xf32> to vector<10x128xf32>
    %5 = arith.addf %2, %4 : vector<10x128xf32>
    %cst_5 = arith.constant 0.000000e+00 : f32
    %6 = vector.broadcast %cst_5 : f32 to vector<10x128xf32>
    %7 = arith.maximumf %5, %6 : vector<10x128xf32>
    %c0_6 = arith.constant 0 : index
    %c0_7 = arith.constant 0 : index
    %8 = vector.load %arg4[%c0_6, %c0_7] : memref<128x128xf32, #tpu.memory_space<vmem>>, vector<128x128xf32>
    %cst_8 = arith.constant dense<0.000000e+00> : vector<10x128xf32>
    %9 = tpu.matmul %7, %8, %cst_8 {dimension_numbers = #tpu.dot_dimension_numbers<[1], [0], [0], [1], [0, 0, 1, 1], [], []>} : vector<10x128xf32>, vector<128x128xf32>, vector<10x128xf32> -> vector<10x128xf32>
    %c0_9 = arith.constant 0 : index
    %c0_10 = arith.constant 0 : index
    %10 = vector.load %arg5[%c0_9, %c0_10] : memref<1x128xf32, #tpu.memory_space<vmem>>, vector<1x128xf32>
    %11 = vector.broadcast %10 : vector<1x128xf32> to vector<10x128xf32>
    %12 = arith.addf %9, %11 : vector<10x128xf32>
    %13 = tpu.iota {dimensions = array<i32: 1>} : vector<1x128xi32>
    %c6_i32 = arith.constant 6 : i32
    %14 = vector.broadcast %c6_i32 : i32 to vector<1x128xi32>
    %15 = arith.cmpi slt, %13, %14 : vector<1x128xi32>
    %c6_i32_11 = arith.constant 6 : i32
    %16 = vector.broadcast %c6_i32_11 : i32 to vector<1x128xi32>
    %17 = arith.cmpi eq, %13, %16 : vector<1x128xi32>
    %cst_12 = arith.constant 0xFF800000 : f32
    %18 = vector.shape_cast %15 : vector<1x128xi1> to vector<1x128xi1>
    %19 = vector.broadcast %18 : vector<1x128xi1> to vector<10x128xi1>
    %20 = vector.broadcast %cst_12 : f32 to vector<10x128xf32>
    %21 = arith.select %19, %12, %20 : vector<10x128xi1>, vector<10x128xf32>
    %cst_13 = arith.constant dense<0xFF800000> : vector<10xf32>
    %22 = vector.multi_reduction <maximumf>, %21, %cst_13 [1] : vector<10x128xf32> to vector<10xf32>
    %23 = vector.shape_cast %22 : vector<10xf32> to vector<10x1xf32>
    %24 = vector.broadcast %23 : vector<10x1xf32> to vector<10x128xf32>
    %25 = arith.subf %21, %24 : vector<10x128xf32>
    %26 = math.exp %25 : vector<10x128xf32>
    %cst_14 = arith.constant dense<0.000000e+00> : vector<10xf32>
    %27 = vector.multi_reduction <add>, %26, %cst_14 [1] : vector<10x128xf32> to vector<10xf32>
    %28 = vector.shape_cast %27 : vector<10xf32> to vector<10x1xf32>
    %cst_15 = arith.constant 1.000000e+00 : f32
    %29 = vector.broadcast %cst_15 : f32 to vector<10x1xf32>
    %30 = arith.divf %29, %28 : vector<10x1xf32>
    %31 = vector.broadcast %30 : vector<10x1xf32> to vector<10x128xf32>
    %32 = arith.mulf %26, %31 : vector<10x128xf32>
    %33 = vector.shape_cast %17 : vector<1x128xi1> to vector<1x128xi1>
    %34 = vector.broadcast %33 : vector<1x128xi1> to vector<10x128xi1>
    %35 = arith.select %34, %12, %32 : vector<10x128xi1>, vector<10x128xf32>
    %c0_16 = arith.constant 0 : index
    %c0_17 = arith.constant 0 : index
    %36 = vector.load %arg6[%c0_16, %c0_17] : memref<10x128xf32, #tpu.memory_space<vmem>>, vector<10x128xf32>
    tpu.vector_store %arg6[%c0_16, %c0_17], %35 {strides = array<i32>} : memref<10x128xf32, #tpu.memory_space<vmem>>, vector<10x128xf32>,
    return
  }
  func.func @transform_0(%arg0: i32) -> (i32, i32) {
    %c0_i32 = arith.constant 0 : i32
    %c0_i32_0 = arith.constant 0 : i32
    return %arg0, %c0_i32 : i32, i32
  }
  func.func @transform_1(%arg0: i32) -> (i32, i32) {
    %c0_i32 = arith.constant 0 : i32
    %c0_i32_0 = arith.constant 0 : i32
    %c0_i32_1 = arith.constant 0 : i32
    return %c0_i32, %c0_i32_0 : i32, i32
  }
  func.func @transform_2(%arg0: i32) -> (i32, i32) {
    %c0_i32 = arith.constant 0 : i32
    %c0_i32_0 = arith.constant 0 : i32
    %c0_i32_1 = arith.constant 0 : i32
    return %c0_i32, %c0_i32_0 : i32, i32
  }
  func.func @transform_3(%arg0: i32) -> (i32, i32) {
    %c0_i32 = arith.constant 0 : i32
    %c0_i32_0 = arith.constant 0 : i32
    %c0_i32_1 = arith.constant 0 : i32
    return %c0_i32, %c0_i32_0 : i32, i32
  }
  func.func @transform_4(%arg0: i32) -> (i32, i32) {
    %c0_i32 = arith.constant 0 : i32
    %c0_i32_0 = arith.constant 0 : i32
    %c0_i32_1 = arith.constant 0 : i32
    return %c0_i32, %c0_i32_0 : i32, i32
  }
  func.func @transform_5(%arg0: i32) -> (i32, i32) {
    %c0_i32 = arith.constant 0 : i32
    %c0_i32_0 = arith.constant 0 : i32
    return %arg0, %c0_i32 : i32, i32
  }
}

</mosaic_0001>

<bundles_post_ra>
// kernel: actor_critic_forward.1
= control target key start
LH: loop header
LB: loop body
LE: loop exit
PB: predicated region body
PF: predicated region fallthrough
CT: control target
= control target key end

     0   :  { %10 = vsyncpa [#allocation3], 0  ;;  %s502_s0 = inlined_call_operand.hbm [shape: f32[10,16], index: 0, kind: input, shape index: {}]   ;;  %s503_s1 = inlined_call_operand.hbm [shape: f32[16,128], index: 1, kind: input, shape index: {}]   ;;  %s504_s2 = inlined_call_operand.vmem [shape: f32[1,128], index: 2, kind: input, shape index: {}]   ;;  %s505_s3 = inlined_call_operand.hbm [shape: f32[128,128], index: 3, kind: input, shape index: {}]   ;;  %s506_s4 = inlined_call_operand.vmem [shape: f32[1,128], index: 4, kind: input, shape index: {}]   ;;  %s507_s5 = inlined_call_operand.vmem [shape: f32[10,128], index: 5, kind: output, shape index: {}]  }
   0x1   :  { %11 = vsyncpa [#allocation5], 0  ;;  %s442_s18 = smov [#allocation4]   ;;  %s443_s20 = smov [#allocation2]  }
   0x2   :  { %s29_s19 = sshll.u32 %s442_s18, 4  ;;  %s17_s21 = sshll.u32 %s443_s20, 4  ;;  %s30_s19 = int_to_ptr.vmem [resolvable:$true] %s29_s19  ;;  %s18_s21 = int_to_ptr.vmem [resolvable:$true] %s17_s21 }
   0x3   :  { %s386_s22 = scalar_lea.vmem %s30_s19, 256  ;;  %p391_p1 = scmp.lt.s32.totalorder %s30_s19, %s30_s19 }
   0x4   :  { %p387_p0 = scmp.ne.s32.totalorder %s30_s19, %s386_s22  ;;  %p392_p2 = scmp.lt.s32.totalorder %s386_s22, %s386_s22 }
   0x6   :  { %p393_p3 = por %p392_p2, %p391_p1 }
   0x8   :  { %p394_p4 = pnand %p393_p3, %p387_p0 }
   0xa   :  { %397 = shalt.err (!%p394_p4)
}
   0xb   :  { %s444_s23 = smov 128   ;;  %s445_s24 = smov 8  }
   0xc   :  { %35 = dma.hbm_to_vmem [thread:$0]  %s503_s1, 256, %s30_s19, [#allocation5], %s444_s23, %s444_s23, %s445_s24  }
   0xd   :  { %s406_s27 = scalar_lea.vmem %s18_s21, 256  ;;  %p411_p6 = scmp.lt.s32.totalorder %s18_s21, %s18_s21 }
   0xe   :  { %p407_p5 = scmp.ne.s32.totalorder %s18_s21, %s406_s27  ;;  %p412_p7 = scmp.lt.s32.totalorder %s406_s27, %s406_s27 }
  0x10   :  { %p413_p8 = por %p412_p7, %p411_p6 }
  0x12   :  { %p414_p9 = pnand %p413_p8, %p407_p5 }
  0x14   :  { %417 = shalt.err (!%p414_p9)
}
  0x15   :  { %23 = dma.hbm_to_vmem [thread:$0]  %s502_s0, 256, %s18_s21, [#allocation3], %s444_s23, %s444_s23, %s445_s24  }
  0x16   :  { %s446_s30 = smov [#allocation6]  }
  0x17   :  { %s43_s6 = sshll.u32 %s446_s30, 4  ;;  %s44_s6 = int_to_ptr.vmem [resolvable:$true] %s43_s6 }
  0x18   :  { %s426_s7 = scalar_lea.vmem %s44_s6, 2048  ;;  %p431_p11 = scmp.lt.s32.totalorder %s44_s6, %s44_s6 }
  0x19   :  { %p427_p10 = scmp.ne.s32.totalorder %s44_s6, %s426_s7  ;;  %p432_p12 = scmp.lt.s32.totalorder %s426_s7, %s426_s7 }
  0x1b   :  { %p433_p13 = por %p432_p12, %p431_p11 }
  0x1d   :  { %p434_p0 = pnand %p433_p13, %p427_p10 }
  0x1f   :  { %437 = shalt.err (!%p434_p0)
}
  0x20   :  { %49 = dma.hbm_to_vmem [thread:$0]  %s505_s3, 2048, %s44_s6, [#allocation5], %s444_s23, %s444_s23, %s445_s24  }
  0x21   :  { %438 = dma.done.wait [#allocation3], 256  }
  0x22   :  { %439 = vsyncadd [#allocation3], 4294967040 }
  0x23   :  { %440 = dma.done.wait [#allocation5], 2304  }
  0x24   :  { %441 = vsyncadd [#allocation5], 4294964992  ;;  %vm72_vm0 = vcmask 130048   ;;  %v64_v0 = vld [vmem:[#allocation4 + $0x8] sm:$0xff]  ;;  %v63_v1 = vld [vmem:[#allocation4] sm:$0xff]  ;;  %v254_v27 = vlaneseq  ;;  %vm264_vm2 = vcmask 1041408  }
  0x25   :  { %v61_v2 = vld [vmem:[#allocation2] sm:$0xff]  ;;  %323 = vmatprep.subr.mxu0 %v64_v0  ;;  %v171_v3 = vld [vmem:[#allocation6 + $0x78] sm:$0xff]  ;;  %v170_v4 = vld [vmem:[#allocation6 + $0x70] sm:$0xff] }
  0x26   :  { %327 = vmatprep.mubr.msk.f32.mxu0 %vm72_vm0, %v61_v2  ;;  %324 = vmatpush3.msra.mxu0 %v64_v0  ;;  %v62_v5 = vld [vmem:[#allocation2 + $0x8] sm:$0x3]  ;;  %v168_v7 = vld [vmem:[#allocation6 + $0x60] sm:$0xff]  ;;  %v167_v8 = vld [vmem:[#allocation6 + $0x58] sm:$0xff]  ;;  %v255_v28 = vand.u32 127, %v254_v27 }
  0x27   :  { %330 = vmatprep.subr.mxu1 %v171_v3  ;;  %325 = vmatprep.subr.mxu0 %v63_v1  ;;  %v169_v6 = vld [vmem:[#allocation6 + $0x68] sm:$0xff]  ;;  %v166_v9 = vld [vmem:[#allocation6 + $0x50] sm:$0xff]  ;;  %v164_v11 = vld [vmem:[#allocation6 + $0x40] sm:$0xff] }
  0x28   :  { %331 = vmatpush3.msra.mxu1 %v171_v3  ;;  %326 = vmatpush3.msra.mxu0 %v63_v1  ;;  %v165_v10 = vld [vmem:[#allocation6 + $0x48] sm:$0xff]  ;;  %v163_v12 = vld [vmem:[#allocation6 + $0x38] sm:$0xff]  ;;  %v162_v13 = vld [vmem:[#allocation6 + $0x30] sm:$0xff]  ;;  %vm256_vm1 = vcmp.lt.s32.totalorder %v255_v28, 6  ;;  %vm257_vm3 = vcmp.eq.s32.totalorder %v255_v28, 6 }
  0x29   :  { %332 = vmatprep.subr.mxu1 %v170_v4  ;;  %328 = vmatmul.mubr.msk.f32.vlgmr.msra.gmra.mxu0 %vm72_vm0, %v62_v5  ;;  %v161_v14 = vld [vmem:[#allocation6 + $0x28] sm:$0xff]  ;;  %v160_v15 = vld [vmem:[#allocation6 + $0x20] sm:$0xff]  ;;  %v159_v16 = vld [vmem:[#allocation6 + $0x18] sm:$0xff] }
  0x2a   :  { %333 = vmatpush3.msra.mxu1 %v170_v4  ;;  %v158_v17 = vld [vmem:[#allocation6 + $0x10] sm:$0xff]  ;;  %v157_v18 = vld [vmem:[#allocation6 + $0x8] sm:$0xff]  ;;  %v156_v19 = vld [vmem:[#allocation6] sm:$0xff] }
  0x2b   :  { %334 = vmatprep.subr.mxu1 %v169_v6  ;;  %v297_v20 = vld [vmem:[%s504_s2] ss:$0 sm:$0xff] }
  0x2c   :  { %335 = vmatpush3.msra.mxu1 %v169_v6  ;;  %v300_v29 = vld [vmem:[%s506_s4] ss:$0 sm:$0xff] }
  0x2d   :  { %336 = vmatprep.subr.mxu1 %v168_v7 }
  0x2e   :  { %337 = vmatpush3.msra.mxu1 %v168_v7 }
  0x2f   :  { %338 = vmatprep.subr.mxu1 %v167_v8 }
  0x30   :  { %339 = vmatpush3.msra.mxu1 %v167_v8 }
  0x31   :  { %340 = vmatprep.subr.mxu1 %v166_v9 }
  0x32   :  { %341 = vmatpush3.msra.mxu1 %v166_v9 }
  0x33   :  { %342 = vmatprep.subr.mxu1 %v165_v10 }
  0x34   :  { %343 = vmatpush3.msra.mxu1 %v165_v10 }
  0x35   :  { %344 = vmatprep.subr.mxu1 %v164_v11 }
  0x36   :  { %345 = vmatpush3.msra.mxu1 %v164_v11 }
  0x37   :  { %346 = vmatprep.subr.mxu1 %v163_v12 }
  0x38   :  { %347 = vmatpush3.msra.mxu1 %v163_v12 }
  0x39   :  { %348 = vmatprep.subr.mxu1 %v162_v13 }
  0x3a   :  { %349 = vmatpush3.msra.mxu1 %v162_v13 }
  0x3b   :  { %350 = vmatprep.subr.mxu1 %v161_v14 }
  0x3c   :  { %351 = vmatpush3.msra.mxu1 %v161_v14 }
  0x3d   :  { %352 = vmatprep.subr.mxu1 %v160_v15 }
  0x3e   :  { %353 = vmatpush3.msra.mxu1 %v160_v15 }
  0x3f   :  { %354 = vmatprep.subr.mxu1 %v159_v16 }
  0x40   :  { %355 = vmatpush3.msra.mxu1 %v159_v16 }
  0x41   :  { %356 = vmatprep.subr.mxu1 %v158_v17 }
  0x42   :  { %357 = vmatpush3.msra.mxu1 %v158_v17 }
  0x43   :  { %358 = vmatprep.subr.mxu1 %v157_v18 }
  0x44   :  { %359 = vmatpush3.msra.mxu1 %v157_v18 }
  0x45   :  { %360 = vmatprep.subr.mxu1 %v156_v19 }
  0x46   :  { %361 = vmatpush3.msra.mxu1 %v156_v19 }
  0xe9   :  { %v329_v21 = vpop.f32.mrf.mxu0 }
  0xea   :  { %v151_v22 = vadd.f32 %v329_v21, %v297_v20 }
  0xeb   :  { %v145_v23 = vpop.f32.mrf.mxu0 }
  0xec   :  { %v146_v24 = vadd.f32 %v297_v20, %v145_v23  ;;  %v155_v26 = vmax.f32 %v151_v22, 0.0 }
  0xee   :  { %v154_v25 = vmax.f32 %v146_v24, 0.0 }
  0xf0   :  { %362 = vmatprep.mubr.f32.mxu1 %v154_v25 }
  0xf1   :  { %363 = vmatmul.mubr.f32.vlgmr.msra.gmra.mxu1 %v155_v26 }
 0x1b1   :  { %v364_v30 = vpop.f32.mrf.mxu1 }
 0x1b2   :  { %v251_v31 = vadd.f32 %v364_v30, %v300_v29 }
 0x1b3   :  { %v245_v32 = vpop.f32.mrf.mxu1 }
 0x1b4   :  { %v261_v33 = vsel %vm256_vm1, %v251_v31, -inf  ;;  %v246_v34 = vadd.f32 %v300_v29, %v245_v32 }
 0x1b5   :  { %v265_v35 = vsel %vm264_vm2, %v261_v33, -inf }
 0x1b6   :  { %266 = vmax.xlane.f32.xlu0 %v265_v35  ;;  %v260_v36 = vsel %vm256_vm1, %v246_v34, -inf }
 0x1ba   :  { %262 = vmax.xlane.f32.xlu0 %v260_v36 }
 0x23f   :  { %v267_v37 = vpop.xlane.xlu0 %266 }
 0x240   :  { %v269_v38 = vsub.f32 %v261_v33, %v267_v37 }
 0x242   :  { %v272_v41 = vmul.f32 1.442695, %v269_v38 }
 0x243   :  { %v263_v39 = vpop.xlane.xlu0 %262 }
 0x244   :  { %v268_v40 = vsub.f32 %v260_v36, %v263_v39 }
 0x246   :  { %v270_v42 = vmul.f32 1.442695, %v268_v40 }
 0x248   :  { %370 = vpow2.f32 %v270_v42 }
 0x249   :  { %372 = vpow2.f32 %v272_v41 }
 0x255   :  { %v371_v43 = vpop.eup %370 }
 0x256   :  { %v373_v44 = vpop.eup %372  ;;  %274 = vadd.xlane.f32.xlu1 %v371_v43 }
 0x257   :  { %v276_v45 = vsel %vm264_vm2, %v373_v44, 0.0 }
 0x25a   :  { %277 = vadd.xlane.f32.xlu1 %v276_v45 }
 0x2df   :  { %v275_v46 = vpop.xlane.xlu1 %274 }
 0x2e0   :  { %374 = vrcp.f32 %v275_v46 }
 0x2e3   :  { %v278_v47 = vpop.xlane.xlu1 %277 }
 0x2e4   :  { %376 = vrcp.f32 %v278_v47 }
 0x2ed   :  { %v375_v48 = vpop.eup %374 }
 0x2ee   :  { %v283_v49 = vmul.f32 %v375_v48, %v371_v43 }
 0x2f0   :  { %v287_v50 = vsel %vm257_vm3, %v246_v34, %v283_v49 }
 0x2f1   :  { %v377_v51 = vpop.eup %376  ;;  %289 = vst [vmem:[%s507_s5] sm:$0xff] %v287_v50 }
 0x2f2   :  { %v284_v52 = vmul.f32 %v377_v51, %v373_v44 }
 0x2f4   :  { %v288_v53 = vsel %vm257_vm3, %v251_v31, %v284_v52 }
 0x2f5   :  { %290 = vst [vmem:[%s507_s5 + $0x8] sm:$0x3] %v288_v53 }
 0x2f6   :  { %295 = vsyncpa [#allocation3], 1 }
 0x2f7   :  { %296 = vsyncpa [#allocation5], 1 }

</bundles_post_ra>
